<compile_context>
chip_gen: v7x
topology: tpu7x:2x2x1
jax: 0.10.0
libtpu: 0.0.40
codegen_flags: <defaults>
</compile_context>

<pallas_src>
import functools

import jax
import jax.numpy as jnp
from jax.experimental import pallas as pl
from jax.experimental.pallas import tpu as pltpu


def _layernorm_kernel(x_ref, gamma_ref, beta_ref, o_ref, *, eps, d_model):
    # x_ref: [TM, D] row tile, feature dim on lanes. gamma/beta: [1, D].
    x = x_ref[...].astype(jnp.float32)

    # Fused single-pass reductions: sum(x) and sum(x*x) can overlap on the
    # XLUs and the tile is traversed once instead of twice.
    s = jnp.sum(x, axis=-1, keepdims=True)          # [TM, 1]
    sq = jnp.sum(x * x, axis=-1, keepdims=True)     # [TM, 1]
    mean = s * (1.0 / d_model)
    # torch.Tensor.std() default is the unbiased estimator (divide by N-1).
    # NOTE: d_model == 1 divides by zero, exactly as the PyTorch spec would.
    var = (sq - d_model * mean * mean) * (1.0 / (d_model - 1))
    var = jnp.maximum(var, 0.0)                     # guard fp cancellation
    denom = jnp.sqrt(var) + eps                     # eps added to std (spec)

    # Per-row reciprocal on the EUP (separate, otherwise-idle VLIW slot) plus
    # one Newton step ([TM,1] only, ~free) to recover ~fp32 accuracy; the
    # per-element work then becomes a single vmul instead of a divide chain.
    inv = pl.reciprocal(denom, approx=True)
    inv = inv * (2.0 - denom * inv)

    y = (x - mean) * inv * gamma_ref[...] + beta_ref[...]
    o_ref[...] = y.astype(o_ref.dtype)


def _round_up(v, m):
    return ((v + m - 1) // m) * m


def _pick_tile(rows, d_model, itemsize, vmem_cap):
    # Target ~2 MiB of x per grid step (per-step overhead ~0.35us is then
    # negligible -> ~85%+ of HBM roofline) but never more than a small
    # fraction of VMEM (2x-buffered in + out + fp32 temporaries must fit on
    # v5e's 16 MiB scoped default and v7x's 64 MiB physical VMEM).
    target_bytes = min(2 << 20, vmem_cap // 16)
    tm = max(8, (target_bytes // (d_model * itemsize)) // 8 * 8)
    # Keep at least 2 grid steps when there is enough work so the "parallel"
    # axis can shard across v7x's two TensorCores.
    tm = min(tm, _round_up(max((rows + 1) // 2, 8), 8))
    tm = min(tm, _round_up(rows, 8))
    return int(tm)


@functools.partial(jax.jit, static_argnames=("eps",))
def layer_norm(x, gamma, beta, *, eps=1e-8):
    """x: [..., d_model]; gamma, beta: [d_model] -> same shape as x."""
    orig_shape = x.shape
    d_model = orig_shape[-1]
    rows = 1
    for s in orig_shape[:-1]:
        rows *= s
    rows = max(rows, 1)

    x2 = x.reshape(rows, d_model)
    gamma2 = gamma.reshape(1, d_model).astype(jnp.float32)
    beta2 = beta.reshape(1, d_model).astype(jnp.float32)

    try:
        vmem_cap = int(pltpu.get_tpu_info().vmem_capacity_bytes)
    except Exception:
        vmem_cap = 64 << 20  # conservative fallback (v7x per-TC VMEM)

    itemsize = jnp.dtype(x.dtype).itemsize
    tm = _pick_tile(rows, d_model, itemsize, vmem_cap)
    grid = (pl.cdiv(rows, tm),)

    # VMEM budget: double-buffered in + out tiles plus ~3 fp32 temporaries.
    tile_bytes = tm * d_model * itemsize
    f32_tile_bytes = tm * d_model * 4
    needed = 4 * tile_bytes + 3 * f32_tile_bytes + (2 << 20)
    vmem_limit = int(min(max(needed, 32 << 20), vmem_cap))

    kernel = functools.partial(_layernorm_kernel, eps=eps, d_model=d_model)

    # No full-array pad / output slice: rows are independent, the ragged last
    # block computes garbage rows that are simply discarded on writeback.
    out = pl.pallas_call(
        kernel,
        out_shape=jax.ShapeDtypeStruct((rows, d_model), x.dtype),
        grid=grid,
        in_specs=[
            pl.BlockSpec((tm, d_model), lambda i: (i, 0)),
            pl.BlockSpec((1, d_model), lambda i: (0, 0)),
            pl.BlockSpec((1, d_model), lambda i: (0, 0)),
        ],
        out_specs=pl.BlockSpec((tm, d_model), lambda i: (i, 0)),
        compiler_params=pltpu.CompilerParams(
            dimension_semantics=("parallel",),
            vmem_limit_bytes=vmem_limit),
    )(x2, gamma2, beta2)

    return out.reshape(orig_shape)


def reference(x, gamma, beta, eps=1e-8):
    mean = jnp.mean(x, axis=-1, keepdims=True)
    std = jnp.std(x, axis=-1, keepdims=True, ddof=1)  # torch unbiased std
    return gamma * (x - mean) / (std + eps) + beta


if __name__ == "__main__":
    # Small shapes consistent with the module: [batch, seq, d_model].
    # d_model = 128 keeps loads/stores lane-dense.
    B, S, D = 2, 8, 128

    key = jax.random.PRNGKey(0)
    kx, kg, kb = jax.random.split(key, 3)

    x = jax.random.normal(kx, (B, S, D), dtype=jnp.float32)
    # Module initializes gamma=ones, beta=zeros; use perturbed params to
    # actually exercise the scale/shift path.
    gamma = 1.0 + 0.1 * jax.random.normal(kg, (D,), dtype=jnp.float32)
    beta = 0.1 * jax.random.normal(kb, (D,), dtype=jnp.float32)

    out = layer_norm(x, gamma, beta, eps=1e-8)
    out = jax.block_until_ready(out)
    ref = reference(x, gamma, beta, eps=1e-8)

    assert out.shape == x.shape
    max_err = jnp.max(jnp.abs(out - ref))
    assert jnp.allclose(out, ref, atol=1e-4, rtol=1e-4), f"max err {max_err}"

    print("KERNEL_OK")
</pallas_src>

<mosaic_0001>
module attributes {stable_mosaic.version = 11 : i64} {
  func.func @_layernorm_kernel(%arg0: i32, %arg1: memref<8x128xf32, #tpu.memory_space<vmem>>, %arg2: memref<1x128xf32, #tpu.memory_space<vmem>>, %arg3: memref<1x128xf32, #tpu.memory_space<vmem>>, %arg4: memref<8x128xf32, #tpu.memory_space<vmem>>) attributes {dimension_semantics = [#tpu.dimension_semantics<parallel>], iteration_bounds = array<i64: 2>, scalar_prefetch = 0 : i64, scratch_operands = 0 : i64, tpu.core_type = #tpu.core_type<tc>, window_params = [{transform_indices = @transform_0, window_bounds = array<i64: 8, 128>}, {pipeline_mode = #tpu.pipeline_mode<synchronous>, transform_indices = @transform_1, window_bounds = array<i64: 1, 128>}, {pipeline_mode = #tpu.pipeline_mode<synchronous>, transform_indices = @transform_2, window_bounds = array<i64: 1, 128>}, {transform_indices = @transform_3, window_bounds = array<i64: 8, 128>}]} {
    %c0 = arith.constant 0 : index
    %c0_0 = arith.constant 0 : index
    %0 = vector.load %arg1[%c0, %c0_0] : memref<8x128xf32, #tpu.memory_space<vmem>>, vector<8x128xf32>
    %cst = arith.constant dense<0.000000e+00> : vector<8xf32>
    %1 = vector.multi_reduction <add>, %0, %cst [1] : vector<8x128xf32> to vector<8xf32>
    %2 = vector.shape_cast %1 : vector<8xf32> to vector<8x1xf32>
    %3 = arith.mulf %0, %0 : vector<8x128xf32>
    %cst_1 = arith.constant dense<0.000000e+00> : vector<8xf32>
    %4 = vector.multi_reduction <add>, %3, %cst_1 [1] : vector<8x128xf32> to vector<8xf32>
    %5 = vector.shape_cast %4 : vector<8xf32> to vector<8x1xf32>
    %cst_2 = arith.constant 7.812500e-03 : f32
    %6 = vector.broadcast %cst_2 : f32 to vector<8x1xf32>
    %7 = arith.mulf %2, %6 : vector<8x1xf32>
    %cst_3 = arith.constant 1.280000e+02 : f32
    %8 = vector.broadcast %cst_3 : f32 to vector<8x1xf32>
    %9 = arith.mulf %8, %7 : vector<8x1xf32>
    %10 = arith.mulf %9, %7 : vector<8x1xf32>
    %11 = arith.subf %5, %10 : vector<8x1xf32>
    %cst_4 = arith.constant 0.00787401571 : f32
    %12 = vector.broadcast %cst_4 : f32 to vector<8x1xf32>
    %13 = arith.mulf %11, %12 : vector<8x1xf32>
    %cst_5 = arith.constant 0.000000e+00 : f32
    %14 = vector.broadcast %cst_5 : f32 to vector<8x1xf32>
    %15 = arith.maximumf %13, %14 : vector<8x1xf32>
    %16 = math.sqrt %15 : vector<8x1xf32>
    %cst_6 = arith.constant 9.99999993E-9 : f32
    %17 = vector.broadcast %cst_6 : f32 to vector<8x1xf32>
    %18 = arith.addf %16, %17 : vector<8x1xf32>
    %19 = tpu.reciprocal %18 {approx = true} : vector<8x1xf32> -> vector<8x1xf32>
    %20 = arith.mulf %18, %19 : vector<8x1xf32>
    %cst_7 = arith.constant 2.000000e+00 : f32
    %21 = vector.broadcast %cst_7 : f32 to vector<8x1xf32>
    %22 = arith.subf %21, %20 : vector<8x1xf32>
    %23 = arith.mulf %19, %22 : vector<8x1xf32>
    %24 = vector.broadcast %7 : vector<8x1xf32> to vector<8x128xf32>
    %25 = arith.subf %0, %24 : vector<8x128xf32>
    %26 = vector.broadcast %23 : vector<8x1xf32> to vector<8x128xf32>
    %27 = arith.mulf %25, %26 : vector<8x128xf32>
    %c0_8 = arith.constant 0 : index
    %c0_9 = arith.constant 0 : index
    %28 = vector.load %arg2[%c0_8, %c0_9] : memref<1x128xf32, #tpu.memory_space<vmem>>, vector<1x128xf32>
    %29 = vector.broadcast %28 : vector<1x128xf32> to vector<8x128xf32>
    %30 = arith.mulf %27, %29 : vector<8x128xf32>
    %c0_10 = arith.constant 0 : index
    %c0_11 = arith.constant 0 : index
    %31 = vector.load %arg3[%c0_10, %c0_11] : memref<1x128xf32, #tpu.memory_space<vmem>>, vector<1x128xf32>
    %32 = vector.broadcast %31 : vector<1x128xf32> to vector<8x128xf32>
    %33 = arith.addf %30, %32 : vector<8x128xf32>
    %c0_12 = arith.constant 0 : index
    %c0_13 = arith.constant 0 : index
    %34 = vector.load %arg4[%c0_12, %c0_13] : memref<8x128xf32, #tpu.memory_space<vmem>>, vector<8x128xf32>
    tpu.vector_store %arg4[%c0_12, %c0_13], %33 {strides = array<i32>} : memref<8x128xf32, #tpu.memory_space<vmem>>, vector<8x128xf32>,
    return
  }
  func.func @transform_0(%arg0: i32) -> (i32, i32) {
    %c0_i32 = arith.constant 0 : i32
    %c0_i32_0 = arith.constant 0 : i32
    return %arg0, %c0_i32 : i32, i32
  }
  func.func @transform_1(%arg0: i32) -> (i32, i32) {
    %c0_i32 = arith.constant 0 : i32
    %c0_i32_0 = arith.constant 0 : i32
    %c0_i32_1 = arith.constant 0 : i32
    return %c0_i32, %c0_i32_0 : i32, i32
  }
  func.func @transform_2(%arg0: i32) -> (i32, i32) {
    %c0_i32 = arith.constant 0 : i32
    %c0_i32_0 = arith.constant 0 : i32
    %c0_i32_1 = arith.constant 0 : i32
    return %c0_i32, %c0_i32_0 : i32, i32
  }
  func.func @transform_3(%arg0: i32) -> (i32, i32) {
    %c0_i32 = arith.constant 0 : i32
    %c0_i32_0 = arith.constant 0 : i32
    return %arg0, %c0_i32 : i32, i32
  }
}

</mosaic_0001>

<bundles_post_ra>
// kernel: layer_norm.1
= control target key start
LH: loop header
LB: loop body
LE: loop exit
PB: predicated region body
PF: predicated region fallthrough
CT: control target
= control target key end

     0   :  { %8 = vsyncpa [#allocation3], 0  ;;  %s668_s0 = inlined_call_operand.hbm [shape: f32[16,128], index: 0, kind: input, shape index: {}]   ;;  %s669_s1 = inlined_call_operand.vmem [shape: f32[1,128], index: 1, kind: input, shape index: {}]   ;;  %s670_s2 = inlined_call_operand.vmem [shape: f32[1,128], index: 2, kind: input, shape index: {}]   ;;  %s671_s3 = inlined_call_operand.hbm [shape: f32[16,128], index: 3, kind: output, shape index: {}]  }
   0x1   :  { %10 = vsyncpa [#allocation3 + $0x1], 0 }
   0x2   :  { %11 = vsyncpa [#allocation4], 0 }
   0x3   :  { %13 = vsyncpa [#allocation4 + $0x1], 0  ;;  %s497_s12 = smov 0   ;;  %s499_s13 = smov 0  }
   0x4   :  { %s501_s14 = smov 0   ;;  %s503_s15 = smov 0  }
   0x5 LB: > { %s518_s16 = sadd.s32 4294967295, %s473_s15   ;;  %s313_s17 = sadd.s32 4294967294, %s473_s15   ;;  %s473_s15 = sphi %s503_s15, %s686_s15   ;;  %s469_s14 = sphi %s501_s14, %s685_s14   ;;  %s465_s13 = sphi %s499_s13, %s684_s13   ;;  %s461_s12 = sphi %s497_s12, %s683_s12  }
   0x6   : > { %s522_s18 = sadd.s32 1, %s473_s15   ;;  %s26_s19 = sadd.s32 1, %s469_s14 }
   0x7   : > { %s23_s20 = ssub.s32 %s473_s15, %s522_s18  ;;  %p33_p0 = scmp.ne.s32.totalorder %s469_s14, %s465_s13 }
   0x8   : > { %p24_p1 = scmp.eq.s32.totalorder %s23_s20, 0  ;;  %p34_p2 = scmp.eq.s32.totalorder %s473_s15, 0 }
   0x9   : > { %p39_p3 = scmp.ne.s32.totalorder %s465_s13, %s461_s12  ;;  %p40_p4 = scmp.eq.s32.totalorder %s518_s16, 0 }
   0xa   : > { %s534_s21 = scalar_select %p24_p1, %s469_s14, %s26_s19  }
   0xb   : > { %p536_p5 = por %p34_p2, %p33_p0  ;;  %p540_p6 = por %p40_p4, %p39_p3 }
   0xc   : > { %p105_p7 = scmp.eq.s32.totalorder %s518_s16, 1  ;;  %p111_p8 = scmp.eq.s32.totalorder %s313_s17, 1 }
   0xd   : > { %p339_p10 = scmp.lt.s32.totalorder %s473_s15, 2  ;;  %s137_s26 = sand.u32 1, %s469_s14  }
   0xe   : > { %p547_p11 = por %p105_p7, %p33_p0  ;;  %p551_p12 = por %p111_p8, %p39_p3 }
   0xf   : > { %s317_s27 = sshll.u32 %s473_s15, 7  ;;  %s316_s28 = sshll.u32 %s137_s26, 3 }
  0x10   : > { %s675_s24 = scalar_select %p547_p11, 1, 0 }
  0x11   : > { %s676_s25 = scalar_select %p551_p12, 1, 0 }
  0x12   : > { %s560_s4 = scalar_lea.hbm %s668_s0, %s317_s27  ;;  %s141_s5 = scalar_lea.vmem [#allocation2], %s316_s28 }
  0x13   : > { %s148_s6 = sshll.u32 %s141_s5, 4  ;;  %p564_p13 = pnand %p339_p10, %p536_p5  ;;  %s568_s6 = int_to_ptr.vmem [resolvable:$true] %s148_s6 }
  0x14   : > { %s138_s8 = scalar_lea.sflag [#allocation3], %s137_s26  ;;  %s377_s9 = scalar_lea.hbm %s560_s4, 128 }
  0x15   : > { %p378_p2 = scmp.ne.s32.totalorder %s560_s4, %s377_s9  ;;  %p379_p3 = pneg %p564_p13 }
  0x16   : > { %s382_s17 = scalar_lea.hbm %s668_s0, 256  ;;  %p383_p5 = scmp.lt.u32.totalorder %s560_s4, %s668_s0 }
  0x17   : > { %p380_p4 = pnand %p379_p3, %p378_p2  ;;  %p384_p8 = scmp.lt.u32.totalorder %s382_s17, %s377_s9 }
  0x18   : > { %p386_p9 = scmp.lt.u32.totalorder %s377_s9, %s560_s4 }
  0x19   : > { %p381_p7 = pneg %p380_p4  ;;  %p385_p10 = por %p384_p8, %p383_p5 }
  0x1b   : > { %p387_p0 = por %p386_p9, %p385_p10 }
  0x1d   : > { %p388_p1 = pnand %p387_p0, %p381_p7 }
  0x1f   : > { %391 = shalt.err (!%p388_p1)
}
  0x20   : > { %s392_s22 = scalar_lea.vmem %s568_s6, 128  ;;  %s475_s26 = smov [#allocation2]  }
  0x21   : > { %p393_p2 = scmp.ne.s32.totalorder %s568_s6, %s392_s22  ;;  %s397_s27 = sshll.u32 %s475_s26, 4  ;;  %s398_s27 = int_to_ptr.vmem [resolvable:$false] %s397_s27 }
  0x22   : > { %s399_s28 = scalar_lea.vmem %s398_s27, 256  ;;  %p400_p11 = scmp.lt.s32.totalorder %s568_s6, %s398_s27 }
  0x23   : > { %p395_p4 = pnand %p393_p2, %p379_p3  ;;  %p401_p5 = scmp.lt.s32.totalorder %s399_s28, %s392_s22 }
  0x25   : > { %p396_p12 = pneg %p395_p4  ;;  %p402_p8 = por %p401_p5, %p400_p11 }
  0x27   : > { %p403_p9 = pnand %p402_p8, %p396_p12 }
  0x29   : > { %406 = shalt.err (!%p403_p9)
}
  0x2a   : > { %334 = dma.hbm_to_vmem [thread:$0]  (!%p564_p13), %s560_s4, 128, %s568_s6, %s138_s8  }
  0x2b   : > { %p678_p0 = scmp.lt.s32.totalorder %s473_s15, 3  ;;  %p679_p1 = scmp.ge.s32.totalorder %s473_s15, 1 }
  0x2d   : > { %p154_p3 = pnand %p679_p1, %p678_p0 }
  0x2e   : > { %s602_s29 = sand.u32 (!%p154_p3), 1, %s465_s13  }
  0x2f   : > { %157 = sbr.rel (%p154_p3) target bundleno = 264 (0x108), region = 32  ;;  %s319_s30 = sshll.u32 (!%p154_p3), %s602_s29, 3 }
  0x30   : > { %s160_s5 = scalar_lea.sflag (!%p154_p3), [#allocation3], %s602_s29  ;;  %s163_s7 = scalar_lea.vmem (!%p154_p3), [#allocation2], %s319_s30 }
  0x36   : > { %452 = dma.done.wait (%p540_p6), %s160_s5, 128  }
  0x37   : > { %454 = vsyncadd (%p540_p6), %s160_s5, 4294967168  ;;  %v186_v0 = vld [vmem:[%s163_s7] sm:$0xff]  ;;  %s324_s9 = sshll.u32 %s518_s16, 7  ;;  %s185_s10 = scalar_lea.vmem [#allocation5], %s319_s30 }
  0x38   : > { %187 = vadd.xlane.f32.xlu0 %v186_v0  ;;  %v189_v1 = vmul.f32 %v186_v0, %v186_v0  ;;  %v321_v21 = vld [vmem:[%s669_s1] ss:$0 sm:$0xff]  ;;  %s243_s11 = sshll.u32 %s185_s10, 4  ;;  %s624_s20 = scalar_lea.hbm %s671_s3, %s324_s9  ;;  %s626_s11 = int_to_ptr.vmem [resolvable:$true] %s243_s11 }
  0x39   : > { %v322_v23 = vld [vmem:[%s670_s2] ss:$0 sm:$0xff]  ;;  %s230_s22 = scalar_lea.sflag [#allocation4], %s602_s29  ;;  %s407_s26 = scalar_lea.vmem %s626_s11, 128 }
  0x3a   : > { %p408_p6 = scmp.ne.s32.totalorder %s626_s11, %s407_s26  ;;  %p680_p11 = scmp.ne.s32.totalorder %s675_s24, 0 }
  0x3b   : > { %s476_s16 = smov [#allocation5]  }
  0x3c   : > { %190 = vadd.xlane.f32.xlu0 %v189_v1  ;;  %p409_p12 = pnand %p408_p6, %p680_p11  ;;  %s411_s27 = sshll.u32 %s476_s16, 4  ;;  %s412_s27 = int_to_ptr.vmem [resolvable:$false] %s411_s27 }
  0x3d   : > { %s413_s28 = scalar_lea.vmem %s412_s27, 256  ;;  %p414_p7 = scmp.lt.s32.totalorder %s626_s11, %s412_s27 }
  0x3e   : > { %p410_p13 = pneg %p409_p12  ;;  %p415_p10 = scmp.lt.s32.totalorder %s413_s28, %s407_s26 }
  0x40   : > { %p416_p2 = por %p415_p10, %p414_p7 }
  0x42   : > { %p417_p4 = pnand %p416_p2, %p410_p13 }
  0xc5   : > { %v188_v2 = vpop.xlane.xlu0 %187 }
  0xc6   : > { %v192_v3 = vmul.f32 0.0078125, %v188_v2 }
  0xc8   : > { %v193_v4 = vmul.f32 128.0, %v192_v3  ;;  %v210_v19 = vsub.f32 %v186_v0, %v192_v3 }
  0xc9   : > { %v191_v5 = vpop.xlane.xlu0 %190 }
  0xca   : > { %v194_v6 = vmul.f32 %v193_v4, %v192_v3 }
  0xcc   : > { %v195_v7 = vsub.f32 %v191_v5, %v194_v6 }
  0xce   : > { %v196_v8 = vmul.f32 0.007874016, %v195_v7 }
  0xd0   : > { %v197_v9 = vmax.f32 %v196_v8, 0.0 }
  0xd2   : > { %373 = vrsqrt.f32 %v197_v9  ;;  %vm200_vm0 = vcmp.eq.f32.partialorder %v197_v9, inf  ;;  %v203_v12 = vand.u32 2147483648, %v197_v9  ;;  %vm202_vm1 = vcmp.eq.f32.partialorder %v197_v9, 0.0 }
  0xdc   : > { %v374_v10 = vpop.eup %373 }
  0xdd   : > { %v199_v11 = vmul.f32 %v374_v10, %v197_v9 }
  0xdf   : > { %v201_v13 = vsel %vm200_vm0, %v197_v9, %v199_v11 }
  0xe0   : > { %v204_v14 = vsel %vm202_vm1, %v203_v12, %v201_v13 }
  0xe1   : > { %v205_v15 = vadd.f32 1e-08, %v204_v14 }
  0xe3   : > { %375 = vrcp.f32 %v205_v15 }
  0xed   : > { %v376_v16 = vpop.eup %375 }
  0xee   : > { %v207_v17 = vmul.f32 %v376_v16, %v205_v15 }
  0xf0   : > { %v208_v18 = vsub.f32 2.0, %v207_v17 }
  0xf2   : > { %v209_v20 = vmul.f32 %v376_v16, %v208_v18 }
  0xf4   : > { %v211_v22 = vmul.f32 %v210_v19, %v209_v20 }
  0xf6   : > { %v219_v24 = vmul.f32 %v321_v21, %v211_v22 }
  0xf8   : > { %v227_v25 = vadd.f32 %v322_v23, %v219_v24 }
  0xfa   : > { %228 = vst [vmem:[%s185_s10] sm:$0xff] %v227_v25 }
  0xfb   : > { %420 = shalt.err (!%p417_p4)
}
  0xfc   : > { %s421_s29 = scalar_lea.hbm %s624_s20, 128  ;;  %s425_s7 = scalar_lea.hbm %s671_s3, 256 }
  0xfd   : > { %p422_p5 = scmp.ne.s32.totalorder %s624_s20, %s421_s29  ;;  %p426_p0 = scmp.lt.u32.totalorder %s624_s20, %s671_s3 }
  0xfe   : > { %p427_p1 = scmp.lt.u32.totalorder %s425_s7, %s421_s29  ;;  %p429_p6 = scmp.lt.u32.totalorder %s421_s29, %s624_s20 }
  0xff   : > { %p423_p8 = pnand %p422_p5, %p680_p11 }
 0x100   : > { %p428_p3 = por %p427_p1, %p426_p0 }
 0x101   : > { %p424_p9 = pneg %p423_p8 }
 0x102   : > { %p430_p12 = por %p429_p6, %p428_p3 }
 0x104   : > { %p431_p13 = pnand %p430_p12, %p424_p9 }
 0x106   : > { %434 = shalt.err (!%p431_p13)
}
 0x107   : > { %329 = dma.vmem_to_hbm [thread:$0]  (%p680_p11), %s626_s11, 128, %s624_s20, %s230_s22  }
 0x108 PF: > { %s255_s6 = sand.u32 1, %s461_s12   ;;  %p681_p7 = scmp.ne.s32.totalorder %s676_s25, 0 }
 0x109   : > { %p682_p10 = scmp.ge.s32.totalorder %s473_s15, 2  ;;  %s256_s8 = scalar_lea.sflag [#allocation4], %s255_s6 }
 0x10b   : > { %p336_p2 = pnand %p682_p10, %p681_p7 }
 0x10d   : > { %456 = dma.done.wait (!%p336_p2), %s256_s8, 128  }
 0x10e   : > { %458 = vsyncadd (!%p336_p2), %s256_s8, 4294967168  ;;  %p16_p4 = scmp.ge.s32.totalorder %s522_s18, 4   ;;  %s683_s12 = smov %s465_s13 }
 0x10f   : > { %s684_s13 = smov %s469_s14  ;;  %s685_s14 = smov %s534_s21 }
 0x110   : > { %s686_s15 = smov %s522_s18  ;;  %18 = sbr.rel (!%p16_p4) target bundleno = 5 (0x5), region = 77 }
 0x117   :  { %261 = vsyncpa [#allocation3], 1 }
 0x118   :  { %263 = vsyncpa [#allocation3 + $0x1], 1 }
 0x119   :  { %264 = vsyncpa [#allocation4], 1 }
 0x11a   :  { %266 = vsyncpa [#allocation4 + $0x1], 1 }

</bundles_post_ra>
